<compile_context>
chip_gen: v7x
topology: tpu7x:2x2x1
jax: 0.10.0
libtpu: 0.0.40
codegen_flags: <defaults>
</compile_context>

<pallas_src>
import jax
import jax.numpy as jnp
from jax.experimental import pallas as pl
from jax.experimental.pallas import tpu as pltpu


def _round_up(x, m):
    return (x + m - 1) // m * m


def _sublane_multiple(dtype):
    # Sublane divisibility for the second-to-last block dim:
    # 8 for 4-byte dtypes, 16 for bf16/f16, 32 for int8/fp8.
    return max(8, 32 // jnp.dtype(dtype).itemsize)


def diag_gaussian_mean_kernel(x_ref, w_ref, b_ref, mean_ref):
    # mean = x @ W + b  (MXU matmul with f32 accumulation), narrow masked store is
    # far cheaper than inflating the write volume with a 128-lane pad.
    mean = jnp.dot(x_ref[...], w_ref[...], preferred_element_type=jnp.float32)
    mean_ref[...] = (mean + b_ref[...]).astype(mean_ref.dtype)


def _pick_batch_tile(B, Din, Dout, dtype, block_rows, min_grid_steps):
    sub = _sublane_multiple(dtype)
    itemsize = jnp.dtype(dtype).itemsize

    # Cap the tile so the double-buffered footprint (x tile + out tile, plus the
    # resident W / bias blocks) stays within v5e's 16 MiB default scoped-VMEM limit.
    budget = 12 * 1024 * 1024
    fixed = 2 * (Din * Dout + Dout) * itemsize
    per_row = 2 * (Din + Dout) * itemsize
    max_tb = max(sub, (max(budget - fixed, 0) // per_row) // sub * sub)
    block_rows = max(sub, min(block_rows, max_tb))

    if B <= block_rows and min_grid_steps <= 1:
        # Single grid step: block == full batch dim, so any B is a legal tile and
        # the per-step overhead is paid exactly once.
        return B, 1

    steps = max(min_grid_steps, pl.cdiv(B, block_rows))
    steps = min(steps, pl.cdiv(B, sub))  # never force tiles below one sublane group
    tb = min(_round_up(pl.cdiv(B, steps), sub), _round_up(B, sub))
    return tb, pl.cdiv(B, tb)


def diag_gaussian_forward(x, weight_t, bias, logstd, *, block_rows=512,
                          min_grid_steps=1):
    """x: (B, Din); weight_t: (Din, Dout); bias, logstd: (1, Dout).

    Returns (mean, std) with mean: (B, Dout) and std: (1, Dout). std is
    batch-independent (exp(logstd)); FixedNormal broadcasts scale against loc,
    so the (1, Dout) row avoids materializing a (B, Dout) std buffer.

    On v7x (2 TensorCores / chip) pass min_grid_steps=2 for large B so the
    "parallel" batch axis actually shards across both cores.
    """
    B, Din = x.shape
    Dout = weight_t.shape[1]

    tb, steps = _pick_batch_tile(B, Din, Dout, x.dtype, block_rows, min_grid_steps)

    itemsize = jnp.dtype(x.dtype).itemsize
    cost = pl.CostEstimate(
        flops=2 * B * Din * Dout,
        transcendentals=0,
        bytes_accessed=(B * Din + Din * Dout + Dout + B * Dout) * itemsize,
    )

    mean = pl.pallas_call(
        diag_gaussian_mean_kernel,
        out_shape=jax.ShapeDtypeStruct((B, Dout), x.dtype),
        grid=(steps,),
        in_specs=[
            pl.BlockSpec((tb, Din), lambda i: (i, 0)),
            # W and bias blocks are grid-invariant (constant index_map): DMA'd once,
            # resident across grid steps. (For very large Din on v7x they could be
            # single-buffered via pipeline_mode=pl.Buffered(1); irrelevant at these
            # sizes, so left default for maximum lowering portability.)
            pl.BlockSpec((Din, Dout), lambda i: (0, 0)),
            pl.BlockSpec((1, Dout), lambda i: (0, 0)),
        ],
        # Unpadded output block: last dim == full array dim satisfies the (8,128)
        # rule, so writeback is exactly B*Dout elements — no 128-lane pad, no
        # wrapper slice pass.
        out_specs=pl.BlockSpec((tb, Dout), lambda i: (i, 0)),
        compiler_params=pltpu.CompilerParams(
            dimension_semantics=("parallel",),
        ),
        cost_estimate=cost,
    )(x, weight_t, bias)

    # std = exp(0 + logstd) is batch-independent: one (1, Dout) exp outside the
    # kernel; no (B, Dout) broadcast materialized.
    std = jnp.exp(logstd).astype(x.dtype)
    return mean, std


def init_params(key, num_inputs, num_outputs, dtype=jnp.float32):
    """Deterministic re-implementation of init(m, init_normc_, constant_(0)):
    weight ~ N(0,1) normalized so each output row has unit L2 norm; bias = 0;
    logstd (AddBias) = 0."""
    w = jax.random.normal(key, (num_outputs, num_inputs), dtype=jnp.float32)
    w = w / jnp.sqrt(jnp.sum(w * w, axis=1, keepdims=True))
    weight_t = jnp.asarray(w.T, dtype)                  # (Din, Dout), pre-transposed
    bias = jnp.zeros((1, num_outputs), dtype)
    logstd = jnp.zeros((1, num_outputs), dtype)
    return weight_t, bias, logstd


if __name__ == "__main__":
    key = jax.random.PRNGKey(0)
    k_x, k_w = jax.random.split(key)

    batch, num_inputs, num_outputs = 64, 32, 8
    x = jax.random.normal(k_x, (batch, num_inputs), dtype=jnp.float32)
    weight_t, bias, logstd = init_params(k_w, num_inputs, num_outputs)

    # Path 1: default tile -> single grid step (B <= block_rows), the fast path.
    mean, std = diag_gaussian_forward(x, weight_t, bias, logstd)
    # Path 2: forced multi-step batch tiling (grid=(4,)), exercises the pipeline.
    mean_tiled, std_tiled = diag_gaussian_forward(
        x, weight_t, bias, logstd, block_rows=16)
    jax.block_until_ready((mean, std, mean_tiled, std_tiled))

    # Reference check against plain JAX.
    ref_mean = x @ weight_t + bias
    ref_std = jnp.exp(logstd)
    assert mean.shape == (batch, num_outputs)
    assert std.shape == (1, num_outputs)
    assert jnp.allclose(mean, ref_mean, atol=1e-5, rtol=1e-5)
    assert jnp.allclose(mean_tiled, ref_mean, atol=1e-5, rtol=1e-5)
    assert jnp.allclose(std, ref_std, atol=1e-6, rtol=1e-6)
    assert jnp.allclose(std_tiled, ref_std, atol=1e-6, rtol=1e-6)
    # Distribution semantics: Normal broadcasts the (1, Dout) scale against loc.
    assert jnp.allclose(jnp.broadcast_to(std, ref_mean.shape),
                        jnp.broadcast_to(ref_std, ref_mean.shape))

    # TODO(synk): FixedNormal (sampling / log_prob) is a distribution object, not a
    # tensor op; the kernel returns its sufficient parameters (mean, std).
    print("KERNEL_OK")
</pallas_src>

<mosaic_0001>
module attributes {stable_mosaic.version = 11 : i64} {
  func.func @diag_gaussian_mean_kernel(%arg0: i32, %arg1: memref<64x32xf32, #tpu.memory_space<vmem>>, %arg2: memref<32x8xf32, #tpu.memory_space<vmem>>, %arg3: memref<1x8xf32, #tpu.memory_space<vmem>>, %arg4: memref<64x8xf32, #tpu.memory_space<vmem>>) attributes {dimension_semantics = [#tpu.dimension_semantics<parallel>], iteration_bounds = array<i64: 1>, scalar_prefetch = 0 : i64, scratch_operands = 0 : i64, tpu.core_type = #tpu.core_type<tc>, window_params = [{transform_indices = @transform_0, window_bounds = array<i64: 64, 32>}, {pipeline_mode = #tpu.pipeline_mode<synchronous>, transform_indices = @transform_1, window_bounds = array<i64: 32, 8>}, {pipeline_mode = #tpu.pipeline_mode<synchronous>, transform_indices = @transform_2, window_bounds = array<i64: 1, 8>}, {transform_indices = @transform_3, window_bounds = array<i64: 64, 8>}]} {
    %c0 = arith.constant 0 : index
    %c0_0 = arith.constant 0 : index
    %0 = vector.load %arg1[%c0, %c0_0] : memref<64x32xf32, #tpu.memory_space<vmem>>, vector<64x32xf32>
    %c0_1 = arith.constant 0 : index
    %c0_2 = arith.constant 0 : index
    %1 = vector.load %arg2[%c0_1, %c0_2] : memref<32x8xf32, #tpu.memory_space<vmem>>, vector<32x8xf32>
    %cst = arith.constant dense<0.000000e+00> : vector<64x8xf32>
    %2 = tpu.matmul %0, %1, %cst {dimension_numbers = #tpu.dot_dimension_numbers<[1], [0], [0], [1], [0, 0, 1, 1], [], []>} : vector<64x32xf32>, vector<32x8xf32>, vector<64x8xf32> -> vector<64x8xf32>
    %c0_3 = arith.constant 0 : index
    %c0_4 = arith.constant 0 : index
    %3 = vector.load %arg3[%c0_3, %c0_4] : memref<1x8xf32, #tpu.memory_space<vmem>>, vector<1x8xf32>
    %4 = vector.broadcast %3 : vector<1x8xf32> to vector<64x8xf32>
    %5 = arith.addf %2, %4 : vector<64x8xf32>
    %c0_5 = arith.constant 0 : index
    %c0_6 = arith.constant 0 : index
    %6 = vector.load %arg4[%c0_5, %c0_6] : memref<64x8xf32, #tpu.memory_space<vmem>>, vector<64x8xf32>
    tpu.vector_store %arg4[%c0_5, %c0_6], %5 {strides = array<i32>} : memref<64x8xf32, #tpu.memory_space<vmem>>, vector<64x8xf32>,
    return
  }
  func.func @transform_0(%arg0: i32) -> (i32, i32) {
    %c0_i32 = arith.constant 0 : i32
    %c0_i32_0 = arith.constant 0 : i32
    return %arg0, %c0_i32 : i32, i32
  }
  func.func @transform_1(%arg0: i32) -> (i32, i32) {
    %c0_i32 = arith.constant 0 : i32
    %c0_i32_0 = arith.constant 0 : i32
    %c0_i32_1 = arith.constant 0 : i32
    return %c0_i32, %c0_i32_0 : i32, i32
  }
  func.func @transform_2(%arg0: i32) -> (i32, i32) {
    %c0_i32 = arith.constant 0 : i32
    %c0_i32_0 = arith.constant 0 : i32
    %c0_i32_1 = arith.constant 0 : i32
    return %c0_i32, %c0_i32_0 : i32, i32
  }
  func.func @transform_3(%arg0: i32) -> (i32, i32) {
    %c0_i32 = arith.constant 0 : i32
    %c0_i32_0 = arith.constant 0 : i32
    return %arg0, %c0_i32 : i32, i32
  }
}

</mosaic_0001>

<bundles_post_ra>
// kernel: tpu_custom_call.1
= control target key start
LH: loop header
LB: loop body
LE: loop exit
PB: predicated region body
PF: predicated region fallthrough
CT: control target
= control target key end

     0   :  { %vm33_vm0 = vcmask 261120   ;;  %vm163_vm1 = vcmask 64512   ;;  %s328_s1 = inlined_call_operand.vmem [shape: f32[32,8], index: 1, kind: input, shape index: {}]   ;;  %s329_s0 = inlined_call_operand.vmem [shape: f32[64,32], index: 0, kind: input, shape index: {}]   ;;  %s330_s2 = inlined_call_operand.vmem [shape: f32[1,8], index: 2, kind: input, shape index: {}]   ;;  %s331_s3 = inlined_call_operand.vmem [shape: f32[64,8], index: 3, kind: output, shape index: {}]  }
   0x1   :  { %v22_v0 = vld [vmem:[%s328_s1] sm:$0xff]  ;;  %v23_v1 = vld [vmem:[%s328_s1 + $0x8] sm:$0xff]  ;;  %v24_v2 = vld [vmem:[%s328_s1 + $0x10] sm:$0xff] }
   0x2   :  { %v217_v3 = vpack.c.bf16 %v23_v1, %v22_v0  ;;  %v25_v4 = vld [vmem:[%s328_s1 + $0x18] sm:$0xff]  ;;  %v14_v5 = vld [vmem:[%s329_s0] sm:$0xff]  ;;  %v15_v8 = vld [vmem:[%s329_s0 + $0x8] sm:$0xff] }
   0x3   :  { %v18_v6 = vld [vmem:[%s329_s0 + $0x20] sm:$0xff]  ;;  %v221_v7 = vpack.c.bf16 %v25_v4, %v24_v2  ;;  %205 = vmatprep.mubr.msk.f32.mxu0 %vm33_vm0, %v14_v5  ;;  %v19_v9 = vld [vmem:[%s329_s0 + $0x28] sm:$0xff]  ;;  %v16_v10 = vld [vmem:[%s329_s0 + $0x10] sm:$0xff] }
   0x4   :  { %211 = vmatprep.mubr.msk.f32.mxu1 %vm33_vm0, %v18_v6  ;;  %218 = vmatprep.subr.bf16.mxu0 %v217_v3  ;;  %v20_v11 = vld [vmem:[%s329_s0 + $0x30] sm:$0xff]  ;;  %v17_v12 = vld [vmem:[%s329_s0 + $0x18] sm:$0xff]  ;;  %v176_v14 = vld [vmem:[%s330_s2] ss:$0 sm:$0xff] }
   0x5   :  { %225 = vmatprep.subr.bf16.mxu1 %v217_v3  ;;  %220 = vmatpush3.bf16.msra.mxu0 %v217_v3  ;;  %v21_v13 = vld [vmem:[%s329_s0 + $0x38] sm:$0xff] }
   0x6   :  { %227 = vmatpush3.bf16.msra.mxu1 %v217_v3  ;;  %222 = vmatprep.subr.bf16.mxu0 %v221_v7 }
   0x7   :  { %226 = vmatprep.subr.bf16.mxu1 %v221_v7 }
   0x9   :  { %224 = vmatpush3.bf16.msra.mxu0 %v221_v7 }
   0xa   :  { %228 = vmatpush3.bf16.msra.mxu1 %v221_v7 }
   0xc   :  { %206 = vmatmul.mubr.msk.f32.vlgmr.msra.gmra.mrb[0].mxu0 %vm33_vm0, %v15_v8 }
   0xd   :  { %212 = vmatmul.mubr.msk.f32.vlgmr.msra.gmra.mrb[0].mxu1 %vm33_vm0, %v19_v9  ;;  %208 = vmatprep.mubr.msk.f32.mxu0 %vm33_vm0, %v16_v10 }
   0xe   :  { %214 = vmatprep.mubr.msk.f32.mxu1 %vm33_vm0, %v20_v11 }
  0x10   :  { %209 = vmatmul.mubr.msk.f32.gmra.mrb[2].mxu0 %vm33_vm0, %v17_v12 }
  0x11   :  { %215 = vmatmul.mubr.msk.f32.gmra.mrb[2].mxu1 %vm33_vm0, %v21_v13 }
  0xdf   :  { %v207_v15 = vpop.f32.mrb[0].mxu0 }
  0xe0   :  { %v213_v16 = vpop.f32.mrb[0].mxu1  ;;  %v130_v17 = vadd.f32 %v207_v15, %v176_v14  ;;  %v124_v19 = vpop.f32.mrb[1].mxu0 }
  0xe1   :  { %v150_v18 = vadd.f32 %v213_v16, %v176_v14  ;;  %v144_v20 = vpop.f32.mrb[1].mxu1  ;;  %v125_v21 = vadd.f32 %v176_v14, %v124_v19 }
  0xe2   :  { %v145_v22 = vadd.f32 %v176_v14, %v144_v20  ;;  %165 = vst.msk [vmem:[%s331_s3 + $0x8] sm:$0xff] %vm163_vm1, %v130_v17 }
  0xe3   :  { %169 = vst.msk [vmem:[%s331_s3 + $0x28] sm:$0xff] %vm163_vm1, %v150_v18  ;;  %164 = vst.msk [vmem:[%s331_s3] sm:$0xff] %vm163_vm1, %v125_v21  ;;  %v210_v23 = vpop.f32.mrb[2].mxu0 }
  0xe4   :  { %168 = vst.msk [vmem:[%s331_s3 + $0x20] sm:$0xff] %vm163_vm1, %v145_v22  ;;  %v216_v24 = vpop.f32.mrb[2].mxu1  ;;  %v140_v25 = vadd.f32 %v210_v23, %v176_v14  ;;  %v134_v27 = vpop.f32.mrb[3].mxu0 }
  0xe5   :  { %v160_v26 = vadd.f32 %v216_v24, %v176_v14  ;;  %v154_v28 = vpop.f32.mrb[3].mxu1  ;;  %v135_v29 = vadd.f32 %v176_v14, %v134_v27 }
  0xe6   :  { %v155_v30 = vadd.f32 %v176_v14, %v154_v28  ;;  %167 = vst.msk [vmem:[%s331_s3 + $0x18] sm:$0xff] %vm163_vm1, %v140_v25 }
  0xe7   :  { %171 = vst.msk [vmem:[%s331_s3 + $0x38] sm:$0xff] %vm163_vm1, %v160_v26  ;;  %166 = vst.msk [vmem:[%s331_s3 + $0x10] sm:$0xff] %vm163_vm1, %v135_v29 }
  0xe8   :  { %170 = vst.msk [vmem:[%s331_s3 + $0x30] sm:$0xff] %vm163_vm1, %v155_v30 }

</bundles_post_ra>
